<compile_context>
chip_gen: v7x
topology: tpu7x:2x2x1
jax: 0.10.0
libtpu: 0.0.40
codegen_flags: <defaults>
</compile_context>

<pallas_src>
import jax
import jax.numpy as jnp
from jax.experimental import pallas as pl
from jax.experimental.pallas import tpu as pltpu


def _pick_tb(B, D, itemsize):
    """Batch-tile size: multiple of 128 when tiling, sized for ~2 MiB/input tile."""
    if B <= 128:
        # Single block whose dims equal the full array dims (always legal).
        return B
    target = max(1, (2 * 1024 * 1024) // (itemsize * D))
    tb = min(1024, target, B)
    tb = max(128, (tb // 128) * 128)
    return tb


def _make_kernel(margin, B, TB):
    def kernel(e1_ref, e2_ref, label_ref, loss_ref, dist_ref):
        i = pl.program_id(0)

        # Upcast inside the kernel (inputs arrive in their native dtype).
        e1 = e1_ref[...].astype(jnp.float32)                    # (TB, D)
        e2 = e2_ref[...].astype(jnp.float32)                    # (TB, D)
        diff = e1 - e2
        sq = jnp.sum(diff * diff, axis=1, keepdims=True)        # (TB, 1)  == d**2
        d = jnp.sqrt(sq)                                        # (TB, 1)  torch.norm(p=2, dim=1)

        label = label_ref[...]                                  # (TB, 1) f32
        hinge = jnp.maximum(margin - d, 0.0)                    # clamp(margin - d, min=0)
        per_sample = 0.5 * ((1.0 - label) * sq + label * (hinge * hinge))

        # Mask rows past the true batch size (ragged last tile reads padding).
        row = jax.lax.broadcasted_iota(jnp.int32, (TB, 1), 0) + i * TB
        per_sample = jnp.where(row < B, per_sample, 0.0)

        # Per-tile partial loss sum; final mean (divide by true B) in wrapper.
        loss_ref[...] = jnp.sum(per_sample, axis=0, keepdims=True)   # (1, 1)
        dist_ref[...] = d                                            # (TB, 1)

    return kernel


def contrastive_loss(embedding1, embedding2, label, margin=1.0):
    """Returns (mean loss scalar, distances of shape (B,)) — matches the torch module."""
    B, D = embedding1.shape
    TB = _pick_tb(B, D, jnp.dtype(embedding1.dtype).itemsize)
    num_tiles = pl.cdiv(B, TB)

    # Label is tiny; reshape/cast in the wrapper is negligible HBM traffic.
    label2d = label.reshape(B, 1).astype(jnp.float32)

    partial_loss, dist = pl.pallas_call(
        _make_kernel(float(margin), B, TB),
        grid=(num_tiles,),
        out_shape=(
            jax.ShapeDtypeStruct((num_tiles, 1), jnp.float32),
            jax.ShapeDtypeStruct((B, 1), jnp.float32),
        ),
        in_specs=[
            pl.BlockSpec((TB, D), lambda i: (i, 0)),
            pl.BlockSpec((TB, D), lambda i: (i, 0)),
            pl.BlockSpec((TB, 1), lambda i: (i, 0)),
        ],
        out_specs=(
            pl.BlockSpec((1, 1), lambda i: (i, 0)),
            pl.BlockSpec((TB, 1), lambda i: (i, 0)),
        ),
        compiler_params=pltpu.CompilerParams(
            dimension_semantics=("parallel",),
        ),
    )(embedding1, embedding2, label2d)

    loss = jnp.sum(partial_loss) / B
    return loss, dist[:, 0]


def _reference(emb1, emb2, label, margin=1.0):
    d = jnp.sqrt(jnp.sum((emb1.astype(jnp.float32) - emb2.astype(jnp.float32)) ** 2, axis=1))
    lbl = label.astype(jnp.float32)
    loss = jnp.mean(
        0.5 * ((1.0 - lbl) * d ** 2 + lbl * jnp.maximum(margin - d, 0.0) ** 2)
    )
    return loss, d


if __name__ == "__main__":
    key = jax.random.PRNGKey(0)
    k1, k2, k3, k4, k5, k6 = jax.random.split(key, 6)

    # --- Small case (single tile, block dims == full array dims) ---
    B, D = 8, 32
    emb1 = jax.random.normal(k1, (B, D), dtype=jnp.float32)
    emb2 = jax.random.normal(k2, (B, D), dtype=jnp.float32)
    label = jax.random.bernoulli(k3, 0.5, (B,)).astype(jnp.float32)

    loss, dist = contrastive_loss(emb1, emb2, label, margin=1.0)
    jax.block_until_ready((loss, dist))

    loss_ref, dist_ref = _reference(emb1, emb2, label, margin=1.0)
    assert jnp.allclose(dist, dist_ref, rtol=1e-4, atol=1e-4), "distance mismatch (small)"
    assert jnp.allclose(loss, loss_ref, rtol=1e-4, atol=1e-4), "loss mismatch (small)"

    # --- Tiled + ragged case (exercises grid pipelining and masking) ---
    B2, D2 = 300, 256
    emb1b = jax.random.normal(k4, (B2, D2), dtype=jnp.float32)
    emb2b = jax.random.normal(k5, (B2, D2), dtype=jnp.float32)
    labelb = jax.random.bernoulli(k6, 0.5, (B2,)).astype(jnp.float32)

    loss2, dist2 = contrastive_loss(emb1b, emb2b, labelb, margin=1.0)
    jax.block_until_ready((loss2, dist2))

    loss2_ref, dist2_ref = _reference(emb1b, emb2b, labelb, margin=1.0)
    assert jnp.allclose(dist2, dist2_ref, rtol=1e-4, atol=1e-4), "distance mismatch (tiled)"
    assert jnp.allclose(loss2, loss2_ref, rtol=1e-4, atol=1e-4), "loss mismatch (tiled)"

    print("KERNEL_OK")
</pallas_src>

<mosaic_0001>
module attributes {stable_mosaic.version = 11 : i64} {
  func.func @kernel(%arg0: i32, %arg1: memref<8x32xf32, #tpu.memory_space<vmem>>, %arg2: memref<8x32xf32, #tpu.memory_space<vmem>>, %arg3: memref<8x1xf32, #tpu.memory_space<vmem>>, %arg4: memref<1x1xf32, #tpu.memory_space<vmem>>, %arg5: memref<8x1xf32, #tpu.memory_space<vmem>>) attributes {dimension_semantics = [#tpu.dimension_semantics<parallel>], iteration_bounds = array<i64: 1>, scalar_prefetch = 0 : i64, scratch_operands = 0 : i64, tpu.core_type = #tpu.core_type<tc>, window_params = [{transform_indices = @transform_0, window_bounds = array<i64: 8, 32>}, {transform_indices = @transform_1, window_bounds = array<i64: 8, 32>}, {transform_indices = @transform_2, window_bounds = array<i64: 8, 1>}, {transform_indices = @transform_3, window_bounds = array<i64: 1, 1>}, {transform_indices = @transform_4, window_bounds = array<i64: 8, 1>}]} {
    %c0 = arith.constant 0 : index
    %c0_0 = arith.constant 0 : index
    %0 = vector.load %arg1[%c0, %c0_0] : memref<8x32xf32, #tpu.memory_space<vmem>>, vector<8x32xf32>
    %c0_1 = arith.constant 0 : index
    %c0_2 = arith.constant 0 : index
    %1 = vector.load %arg2[%c0_1, %c0_2] : memref<8x32xf32, #tpu.memory_space<vmem>>, vector<8x32xf32>
    %2 = arith.subf %0, %1 : vector<8x32xf32>
    %3 = arith.mulf %2, %2 : vector<8x32xf32>
    %cst = arith.constant dense<0.000000e+00> : vector<8xf32>
    %4 = vector.multi_reduction <add>, %3, %cst [1] : vector<8x32xf32> to vector<8xf32>
    %5 = vector.shape_cast %4 : vector<8xf32> to vector<8x1xf32>
    %6 = math.sqrt %5 : vector<8x1xf32>
    %c0_3 = arith.constant 0 : index
    %c0_4 = arith.constant 0 : index
    %7 = vector.load %arg3[%c0_3, %c0_4] : memref<8x1xf32, #tpu.memory_space<vmem>>, vector<8x1xf32>
    %cst_5 = arith.constant 1.000000e+00 : f32
    %8 = vector.broadcast %cst_5 : f32 to vector<8x1xf32>
    %9 = arith.subf %8, %6 : vector<8x1xf32>
    %cst_6 = arith.constant 0.000000e+00 : f32
    %10 = vector.broadcast %cst_6 : f32 to vector<8x1xf32>
    %11 = arith.maximumf %9, %10 : vector<8x1xf32>
    %cst_7 = arith.constant 1.000000e+00 : f32
    %12 = vector.broadcast %cst_7 : f32 to vector<8x1xf32>
    %13 = arith.subf %12, %7 : vector<8x1xf32>
    %14 = arith.mulf %13, %5 : vector<8x1xf32>
    %15 = arith.mulf %11, %11 : vector<8x1xf32>
    %16 = arith.mulf %7, %15 : vector<8x1xf32>
    %17 = arith.addf %14, %16 : vector<8x1xf32>
    %cst_8 = arith.constant 5.000000e-01 : f32
    %18 = vector.broadcast %cst_8 : f32 to vector<8x1xf32>
    %19 = arith.mulf %18, %17 : vector<8x1xf32>
    %20 = tpu.iota {dimensions = array<i32: 0>} : vector<8x1xi32>
    %c8_i32 = arith.constant 8 : i32
    %21 = arith.muli %arg0, %c8_i32 : i32
    %22 = vector.broadcast %21 : i32 to vector<8x1xi32>
    %23 = arith.addi %20, %22 : vector<8x1xi32>
    %c8_i32_9 = arith.constant 8 : i32
    %24 = vector.broadcast %c8_i32_9 : i32 to vector<8x1xi32>
    %25 = arith.cmpi slt, %23, %24 : vector<8x1xi32>
    %cst_10 = arith.constant 0.000000e+00 : f32
    %26 = vector.broadcast %cst_10 : f32 to vector<8x1xf32>
    %27 = arith.select %25, %19, %26 : vector<8x1xi1>, vector<8x1xf32>
    %cst_11 = arith.constant dense<0.000000e+00> : vector<1xf32>
    %28 = vector.multi_reduction <add>, %27, %cst_11 [0] : vector<8x1xf32> to vector<1xf32>
    %29 = vector.shape_cast %28 : vector<1xf32> to vector<1x1xf32>
    %c0_12 = arith.constant 0 : index
    %c0_13 = arith.constant 0 : index
    %30 = vector.load %arg4[%c0_12, %c0_13] : memref<1x1xf32, #tpu.memory_space<vmem>>, vector<1x1xf32>
    tpu.vector_store %arg4[%c0_12, %c0_13], %29 {strides = array<i32>} : memref<1x1xf32, #tpu.memory_space<vmem>>, vector<1x1xf32>,
    %c0_14 = arith.constant 0 : index
    %c0_15 = arith.constant 0 : index
    %31 = vector.load %arg5[%c0_14, %c0_15] : memref<8x1xf32, #tpu.memory_space<vmem>>, vector<8x1xf32>
    tpu.vector_store %arg5[%c0_14, %c0_15], %6 {strides = array<i32>} : memref<8x1xf32, #tpu.memory_space<vmem>>, vector<8x1xf32>,
    return
  }
  func.func @transform_0(%arg0: i32) -> (i32, i32) {
    %c0_i32 = arith.constant 0 : i32
    %c0_i32_0 = arith.constant 0 : i32
    return %arg0, %c0_i32 : i32, i32
  }
  func.func @transform_1(%arg0: i32) -> (i32, i32) {
    %c0_i32 = arith.constant 0 : i32
    %c0_i32_0 = arith.constant 0 : i32
    return %arg0, %c0_i32 : i32, i32
  }
  func.func @transform_2(%arg0: i32) -> (i32, i32) {
    %c0_i32 = arith.constant 0 : i32
    %c0_i32_0 = arith.constant 0 : i32
    return %arg0, %c0_i32 : i32, i32
  }
  func.func @transform_3(%arg0: i32) -> (i32, i32) {
    %c0_i32 = arith.constant 0 : i32
    %c0_i32_0 = arith.constant 0 : i32
    return %arg0, %c0_i32 : i32, i32
  }
  func.func @transform_4(%arg0: i32) -> (i32, i32) {
    %c0_i32 = arith.constant 0 : i32
    %c0_i32_0 = arith.constant 0 : i32
    return %arg0, %c0_i32 : i32, i32
  }
}

</mosaic_0001>

<bundles_post_ra>
// kernel: tpu_custom_call.1
= control target key start
LH: loop header
LB: loop body
LE: loop exit
PB: predicated region body
PF: predicated region fallthrough
CT: control target
= control target key end

     0   :  { %10 = vsyncpa [#allocation3], 0  ;;  %s202_s0 = inlined_call_operand.vmem [shape: f32[8,32], index: 0, kind: input, shape index: {}]   ;;  %s203_s1 = inlined_call_operand.hbm [shape: f32[8,32], index: 1, kind: input, shape index: {}]   ;;  %s204_s2 = inlined_call_operand.vmem [shape: f32[8,1], index: 2, kind: input, shape index: {}]   ;;  %s205_s3 = inlined_call_operand.hbm [shape: f32[1,1], index: 3, kind: output, shape index: {0}]   ;;  %s206_s4 = inlined_call_operand.vmem [shape: f32[8,1], index: 4, kind: output, shape index: {1}]  }
   0x1   :  { %11 = vsyncpa [#allocation4], 0  ;;  %s142_s15 = smov [#allocation2]   ;;  %s94_s19 = scalar_lea.hbm %s203_s1, 128 }
   0x2   :  { %s20_s16 = sshll.u32 %s142_s15, 4  ;;  %p95_p0 = scmp.ne.s32.totalorder %s203_s1, %s94_s19  ;;  %s21_s16 = int_to_ptr.vmem [resolvable:$true] %s20_s16 }
   0x3   :  { %p98_p1 = scmp.lt.u32.totalorder %s94_s19, %s203_s1 }
   0x5   :  { %p100_p2 = pnand %p98_p1, %p95_p0 }
   0x7   :  { %103 = shalt.err (!%p100_p2)
}
   0x8   :  { %s104_s24 = scalar_lea.vmem %s21_s16, 128  ;;  %p109_p4 = scmp.lt.s32.totalorder %s21_s16, %s21_s16 }
   0x9   :  { %p105_p3 = scmp.ne.s32.totalorder %s21_s16, %s104_s24  ;;  %p110_p5 = scmp.lt.s32.totalorder %s104_s24, %s104_s24 }
   0xb   :  { %p111_p6 = por %p110_p5, %p109_p4 }
   0xd   :  { %p112_p7 = pnand %p111_p6, %p105_p3 }
   0xf   :  { %115 = shalt.err (!%p112_p7)
}
  0x10   :  { %23 = dma.hbm_to_vmem [thread:$0]  %s203_s1, 128, %s21_s16, [#allocation3]  }
  0x11   :  { %138 = dma.done.wait [#allocation3], 128  }
  0x12   :  { %139 = vsyncadd [#allocation3], 4294967168  ;;  %v29_v0 = vld [vmem:[%s202_s0] sm:$0xff]  ;;  %vm33_vm0 = vcmask 261120   ;;  %vm60_vm2 = vcmask 7168   ;;  %s143_s5 = smov [#allocation5]  }
  0x13   :  { %v30_v1 = vld [vmem:[#allocation2] sm:$0xff]  ;;  %s77_s6 = sshll.u32 %s143_s5, 4  ;;  %vm68_vm4 = vcmask 0   ;;  %s78_s6 = int_to_ptr.vmem [resolvable:$true] %s77_s6 }
  0x14   :  { %v31_v2 = vsub.f32 %v29_v0, %v30_v1  ;;  %v44_v11 = vld [vmem:[%s204_s2] sm:$0xff]  ;;  %s116_s2 = scalar_lea.vmem %s78_s6, 16  ;;  %p121_p9 = scmp.lt.s32.totalorder %s78_s6, %s78_s6 }
  0x15   :  { %v47_v14 = vsub.f32 1.0, %v44_v11  ;;  %p117_p8 = scmp.ne.s32.totalorder %s78_s6, %s116_s2 }
  0x16   :  { %v32_v3 = vmul.f32 %v31_v2, %v31_v2 }
  0x18   :  { %v34_v4 = vsel %vm33_vm0, %v32_v3, 0.0 }
  0x19   :  { %35 = vadd.xlane.f32.xlu0 %v34_v4 }
  0xa6   :  { %v36_v5 = vpop.xlane.xlu0 %35 }
  0xa7   :  { %92 = vrsqrt.f32 %v36_v5  ;;  %vm39_vm1 = vcmp.eq.f32.partialorder %v36_v5, inf  ;;  %v42_v8 = vand.u32 2147483648, %v36_v5  ;;  %vm41_vm3 = vcmp.eq.f32.partialorder %v36_v5, 0.0 }
  0xa8   :  { %v48_v16 = vmul.f32 %v47_v14, %v36_v5 }
  0xb1   :  { %v93_v6 = vpop.eup %92 }
  0xb2   :  { %v38_v7 = vmul.f32 %v93_v6, %v36_v5 }
  0xb4   :  { %v40_v9 = vsel %vm39_vm1, %v36_v5, %v38_v7 }
  0xb5   :  { %v43_v10 = vsel %vm41_vm3, %v42_v8, %v40_v9 }
  0xb6   :  { %v45_v12 = vsub.f32 1.0, %v43_v10  ;;  %70 = vst.msk [vmem:[%s206_s4] sm:$0xff] %vm60_vm2, %v43_v10  ;;  %s120_s4 = scalar_lea.vmem %s78_s6, 32 }
  0xb7   :  { %p122_p10 = scmp.lt.s32.totalorder %s120_s4, %s116_s2 }
  0xb8   :  { %v46_v13 = vmax.f32 %v45_v12, 0.0 }
  0xb9   :  { %p123_p11 = por %p122_p10, %p121_p9 }
  0xba   :  { %v49_v15 = vmul.f32 %v46_v13, %v46_v13 }
  0xbb   :  { %p124_p12 = pnand %p123_p11, %p117_p8 }
  0xbc   :  { %v50_v17 = vmul.f32 %v49_v15, %v44_v11 }
  0xbe   :  { %v51_v18 = vadd.f32 %v50_v17, %v48_v16 }
  0xc0   :  { %v52_v19 = vmul.f32 0.5, %v51_v18 }
  0xc2   :  { %v61_v20 = vsel %vm60_vm2, %v52_v19, 0.0 }
  0xc3   :  { %v62_v21 = vrot.slane %v61_v20, 4 }
  0xc5   :  { %v63_v22 = vadd.f32 %v62_v21, %v61_v20 }
  0xc7   :  { %v64_v23 = vrot.slane %v63_v22, 2 }
  0xc9   :  { %v65_v24 = vadd.f32 %v64_v23, %v63_v22 }
  0xcb   :  { %v66_v25 = vrot.slane %v65_v24, 1 }
  0xcd   :  { %v67_v26 = vadd.f32 %v66_v25, %v65_v24 }
  0xcf   :  { %69 = vst.msk [vmem:[#allocation5] sm:$0x1] %vm68_vm4, %v67_v26 }
  0xd0   :  { %127 = shalt.err (!%p124_p12)
}
  0xd1   :  { %s128_s9 = scalar_lea.hbm %s205_s3, 16 }
  0xd2   :  { %p129_p13 = scmp.ne.s32.totalorder %s205_s3, %s128_s9  ;;  %p132_p0 = scmp.lt.u32.totalorder %s128_s9, %s205_s3 }
  0xd4   :  { %p134_p1 = pnand %p132_p0, %p129_p13 }
  0xd6   :  { %137 = shalt.err (!%p134_p1)
}
  0xd7   :  { %80 = dma.vmem_to_hbm [thread:$0]  %s78_s6, 16, %s205_s3, [#allocation4]  }
  0xd8   :  { %140 = dma.done.wait [#allocation4], 16  }
  0xd9   :  { %141 = vsyncadd [#allocation4], 4294967280 }
  0xda   :  { %88 = vsyncpa [#allocation3], 1 }
  0xdb   :  { %89 = vsyncpa [#allocation4], 1 }

</bundles_post_ra>
